<compile_context>
chip_gen: v5e
topology: v5e:2x2
jax: 0.10.0
libtpu: 0.0.40
codegen_flags: <defaults>
</compile_context>

<pallas_src>
import jax
import jax.numpy as jnp
from jax.experimental import pallas as pl
from jax.experimental.pallas import tpu as pltpu


# ----------------------------- kernels ------------------------------------- #

def _kernel_with_bias(h_ref, w_ref, b_ref, out_ref):
    # h_ref: (nb, B, D), w_ref: (nb, D, P) -> batched per-node matmul on the MXU,
    # f32 accumulation regardless of the HBM storage dtype.
    y = jax.lax.dot_general(
        h_ref[...], w_ref[...],
        dimension_numbers=(((2,), (1,)), ((0,), (0,))),
        preferred_element_type=jnp.float32)          # (nb, B, P)
    y = y + b_ref[...].astype(jnp.float32)           # (1, P) broadcast
    # One explicit n<->b (sublane) transpose so the store is a single lane-dense,
    # P-last write already in (batch, node, proj) order.
    out_ref[...] = jnp.transpose(y, (1, 0, 2)).astype(out_ref.dtype)


def _kernel_no_bias(h_ref, w_ref, out_ref):
    y = jax.lax.dot_general(
        h_ref[...], w_ref[...],
        dimension_numbers=(((2,), (1,)), ((0,), (0,))),
        preferred_element_type=jnp.float32)          # (nb, B, P)
    out_ref[...] = jnp.transpose(y, (1, 0, 2)).astype(out_ref.dtype)


# ----------------------------- tiling helpers ------------------------------ #

def _vmem_capacity_bytes():
    """Physical VMEM per TensorCore; conservative fallback = v7x's 64 MiB."""
    try:
        info = pltpu.get_tpu_info()
        cap = getattr(info, "vmem_capacity_bytes", None)
        if cap:
            return int(cap)
    except Exception:
        pass
    return 64 << 20


def _choose_node_block(N, B, D, P, in_itemsize, out_itemsize, vmem_budget):
    """Budget-aware node block: biggest block whose double-buffered tiles fit."""
    per_node = 2 * in_itemsize * (B * D + D * P) + 2 * out_itemsize * (B * P)
    nb = max(1, vmem_budget // max(per_node, 1))
    nb = min(nb, N)
    if N >= 16:
        # Keep at least 2 grid steps so the "parallel" node axis can shard across
        # the two TensorCores on v7x (no-op on v5e/v6e).
        nb = min(nb, pl.cdiv(N, 2))
    # Output node axis is a sublane dim -> keep it a multiple of 8.
    nb = max(8, (nb // 8) * 8)
    return int(nb), int(per_node)


# ----------------------------- public wrapper ------------------------------ #

def project_layer(h, weights, bias=None, *, node_block=None, storage_dtype=None,
                  out_dtype=None):
    """h: (N, B, D), weights: (N, D, P), bias: (P,) or None -> (B, N, P)."""
    N, B, D = h.shape
    Nw, Dw, P = weights.shape
    assert (Nw, Dw) == (N, D), "weights must be (num_nodes, node_dim, project_hidden)"
    # TODO(synk): heterogeneous per-node node_dims (the nn.ParameterList general case)
    # would need zero-padding each W_i to max(node_dims); only the uniform case is packed.

    out_dtype = out_dtype or h.dtype

    # Memory-bound kernel: optionally keep h/weights bf16 *in HBM* (halves DMA bytes
    # and VMEM tile footprint); the MXU still accumulates in f32.
    if storage_dtype is not None:
        h = h.astype(storage_dtype)
        weights = weights.astype(storage_dtype)
    in_itemsize = jnp.dtype(h.dtype).itemsize
    out_itemsize = jnp.dtype(out_dtype).itemsize

    vmem_cap = _vmem_capacity_bytes()
    vmem_budget = max(16 << 20, vmem_cap // 2 - (4 << 20))
    auto_nb, per_node = _choose_node_block(N, B, D, P, in_itemsize, out_itemsize,
                                           vmem_budget)
    nb = int(node_block) if node_block is not None else auto_nb

    # Arbitrary num_nodes: zero-pad the node axis up to a block multiple; padded
    # rows produce zeros that are sliced off below (bias on padded rows is dropped).
    N_pad = pl.cdiv(N, nb) * nb
    if N_pad != N:
        h = jnp.pad(h, ((0, N_pad - N), (0, 0), (0, 0)))
        weights = jnp.pad(weights, ((0, N_pad - N), (0, 0), (0, 0)))

    # Scoped-VMEM limit: enough for the double-buffered tiles + headroom, but always
    # below physical capacity (64 MiB/TC on v7x, 128 MiB on v5e/v6e).
    needed = per_node * nb + 4 * P + (2 << 20)
    vmem_limit = max(32 << 20, needed + (4 << 20))
    vmem_limit = int(min(vmem_limit, vmem_cap - (2 << 20)))

    grid = (N_pad // nb,)
    in_specs = [
        pl.BlockSpec((nb, B, D), lambda i: (i, 0, 0)),   # h block
        pl.BlockSpec((nb, D, P), lambda i: (i, 0, 0)),   # weight block (the big stream)
    ]
    operands = [h, weights]
    if bias is not None:
        in_specs.append(pl.BlockSpec((1, P), lambda i: (0, 0)))     # loop-invariant
        operands.append(bias.reshape(1, P).astype(jnp.float32))
        kernel = _kernel_with_bias
    else:
        kernel = _kernel_no_bias                                     # no zero-bias DMA

    out = pl.pallas_call(
        kernel,
        out_shape=jax.ShapeDtypeStruct((B, N_pad, P), out_dtype),
        grid=grid,
        in_specs=in_specs,
        out_specs=pl.BlockSpec((B, nb, P), lambda i: (0, i, 0)),
        compiler_params=pltpu.CompilerParams(
            dimension_semantics=("parallel",),   # independent node blocks (v7x megacore)
            vmem_limit_bytes=vmem_limit,
        ),
    )(*operands)

    return out[:, :N, :] if N_pad != N else out


# ----------------------------- reference & init ---------------------------- #

def reference_project_layer(h, weights, bias=None):
    """Pure-JAX reference mirroring the PyTorch forward."""
    out = jnp.einsum("nbd,ndp->bnp", h, weights)
    if bias is not None:
        out = out + bias
    return out


def init_params(key, num_nodes, node_dim, project_hidden):
    kw, kb = jax.random.split(key)
    # PyTorch init: uniform(-1/sqrt(project_hidden), +1/sqrt(project_hidden))
    std = 1.0 / (project_hidden ** 0.5)
    weights = jax.random.uniform(kw, (num_nodes, node_dim, project_hidden),
                                 jnp.float32, minval=-std, maxval=std)
    # bias_term starts at zeros in the module; use a small random value here so the
    # bias-add path is actually exercised by the check.
    bias = 0.1 * jax.random.normal(kb, (project_hidden,), jnp.float32)
    return weights, bias


# ----------------------------- demo / self-check ---------------------------- #

if __name__ == "__main__":
    key = jax.random.PRNGKey(0)
    k1, k2, k3 = jax.random.split(key, 3)

    # Case 1: block-aligned node count, with bias, f32 end-to-end.
    N, B, D, P = 8, 4, 32, 128
    h = jax.random.normal(k1, (N, B, D), jnp.float32)
    weights, bias = init_params(k2, N, D, P)
    out = jax.block_until_ready(project_layer(h, weights, bias))
    ref = reference_project_layer(h, weights, bias)
    assert out.shape == (B, N, P)
    assert jnp.allclose(out, ref, atol=1e-5, rtol=1e-5), "f32 bias path mismatch"

    # Case 2: node count NOT a multiple of 8 (exercises the padding path), no bias.
    N2 = 10
    h2 = jax.random.normal(k3, (N2, B, D), jnp.float32)
    w2, _ = init_params(k2, N2, D, P)
    out2 = jax.block_until_ready(project_layer(h2, w2, bias=None))
    ref2 = reference_project_layer(h2, w2, None)
    assert out2.shape == (B, N2, P)
    assert jnp.allclose(out2, ref2, atol=1e-5, rtol=1e-5), "padded / no-bias path mismatch"

    # Case 3: bf16 weights/activations stored in HBM (memory-bound win), f32 accumulation.
    out3 = jax.block_until_ready(
        project_layer(h, weights, bias, storage_dtype=jnp.bfloat16))
    assert jnp.allclose(out3, ref, atol=5e-2, rtol=5e-2), "bf16-storage path mismatch"

    print("KERNEL_OK")
</pallas_src>

<mosaic_0001>
module attributes {stable_mosaic.version = 11 : i64} {
  func.func @_kernel_with_bias(%arg0: i32, %arg1: memref<8x4x32xf32, #tpu.memory_space<vmem>>, %arg2: memref<8x32x128xf32, #tpu.memory_space<vmem>>, %arg3: memref<1x128xf32, #tpu.memory_space<vmem>>, %arg4: memref<4x8x128xf32, #tpu.memory_space<vmem>>) attributes {dimension_semantics = [#tpu.dimension_semantics<parallel>], iteration_bounds = array<i64: 1>, scalar_prefetch = 0 : i64, scratch_operands = 0 : i64, tpu.core_type = #tpu.core_type<tc>, window_params = [{transform_indices = @transform_0, window_bounds = array<i64: 8, 4, 32>}, {transform_indices = @transform_1, window_bounds = array<i64: 8, 32, 128>}, {pipeline_mode = #tpu.pipeline_mode<synchronous>, transform_indices = @transform_2, window_bounds = array<i64: 1, 128>}, {transform_indices = @transform_3, window_bounds = array<i64: 4, 8, 128>}]} {
    %c0 = arith.constant 0 : index
    %c0_0 = arith.constant 0 : index
    %c0_1 = arith.constant 0 : index
    %0 = vector.load %arg1[%c0, %c0_0, %c0_1] : memref<8x4x32xf32, #tpu.memory_space<vmem>>, vector<8x4x32xf32>
    %c0_2 = arith.constant 0 : index
    %c0_3 = arith.constant 0 : index
    %c0_4 = arith.constant 0 : index
    %1 = vector.load %arg2[%c0_2, %c0_3, %c0_4] : memref<8x32x128xf32, #tpu.memory_space<vmem>>, vector<8x32x128xf32>
    %cst = arith.constant dense<0.000000e+00> : vector<8x4x128xf32>
    %2 = tpu.matmul %0, %1, %cst {dimension_numbers = #tpu.dot_dimension_numbers<[2], [1], [1], [2], [0, 0, 0, 1, 1, 2], [0], [0]>} : vector<8x4x32xf32>, vector<8x32x128xf32>, vector<8x4x128xf32> -> vector<8x4x128xf32>
    %c0_5 = arith.constant 0 : index
    %c0_6 = arith.constant 0 : index
    %3 = vector.load %arg3[%c0_5, %c0_6] : memref<1x128xf32, #tpu.memory_space<vmem>>, vector<1x128xf32>
    %4 = vector.shape_cast %3 : vector<1x128xf32> to vector<1x1x128xf32>
    %5 = vector.broadcast %4 : vector<1x1x128xf32> to vector<8x4x128xf32>
    %6 = arith.addf %2, %5 : vector<8x4x128xf32>
    %7 = tpu.transpose %6, [1, 0, 2] : vector<8x4x128xf32> -> vector<4x8x128xf32>
    %c0_7 = arith.constant 0 : index
    %c0_8 = arith.constant 0 : index
    %c0_9 = arith.constant 0 : index
    %8 = vector.load %arg4[%c0_7, %c0_8, %c0_9] : memref<4x8x128xf32, #tpu.memory_space<vmem>>, vector<4x8x128xf32>
    tpu.vector_store %arg4[%c0_7, %c0_8, %c0_9], %7 {strides = array<i32>} : memref<4x8x128xf32, #tpu.memory_space<vmem>>, vector<4x8x128xf32>,
    return
  }
  func.func @transform_0(%arg0: i32) -> (i32, i32, i32) {
    %c0_i32 = arith.constant 0 : i32
    %c0_i32_0 = arith.constant 0 : i32
    %c0_i32_1 = arith.constant 0 : i32
    return %arg0, %c0_i32, %c0_i32_0 : i32, i32, i32
  }
  func.func @transform_1(%arg0: i32) -> (i32, i32, i32) {
    %c0_i32 = arith.constant 0 : i32
    %c0_i32_0 = arith.constant 0 : i32
    %c0_i32_1 = arith.constant 0 : i32
    return %arg0, %c0_i32, %c0_i32_0 : i32, i32, i32
  }
  func.func @transform_2(%arg0: i32) -> (i32, i32) {
    %c0_i32 = arith.constant 0 : i32
    %c0_i32_0 = arith.constant 0 : i32
    %c0_i32_1 = arith.constant 0 : i32
    return %c0_i32, %c0_i32_0 : i32, i32
  }
  func.func @transform_3(%arg0: i32) -> (i32, i32, i32) {
    %c0_i32 = arith.constant 0 : i32
    %c0_i32_0 = arith.constant 0 : i32
    %c0_i32_1 = arith.constant 0 : i32
    return %c0_i32, %arg0, %c0_i32_0 : i32, i32, i32
  }
}

</mosaic_0001>

<bundles_post_ra>
// kernel: tpu_custom_call.1
= control target key start
LH: loop header
LB: loop body
LE: loop exit
PB: predicated region body
PF: predicated region fallthrough
CT: control target
= control target key end

     0   :  { %8 = vsyncpa [#allocation3], 0  ;;  %s520_s0 = inlined_call_operand.hbm [shape: f32[8,4,32], index: 0, kind: input, shape index: {}]   ;;  %s521_s1 = inlined_call_operand.hbm [shape: f32[8,32,128], index: 1, kind: input, shape index: {}]   ;;  %s522_s2 = inlined_call_operand.vmem [shape: f32[1,128], index: 2, kind: input, shape index: {}]   ;;  %s523_s3 = inlined_call_operand.hbm [shape: f32[4,8,128], index: 3, kind: output, shape index: {}]  }
   0x1   :  { %9 = vsyncpa [#allocation6], 0 }
   0x2   :  { %10 = vsyncpa [#allocation4], 0  ;;  %s15_s14 = sshll.u32 %s520_s0, 4  ;;  %s453_s15 = smov [#allocation2]   ;;  %s16_s14 = int_to_ptr.hbm [resolvable:$true] %s15_s14 }
   0x3   :  { %s17_s16 = sshll.u32 %s453_s15, 4  ;;  %s28_s19 = sshll.u32 %s521_s1, 4  ;;  %s18_s16 = int_to_ptr.vmem [resolvable:$true] %s17_s16  ;;  %s29_s19 = int_to_ptr.hbm [resolvable:$true] %s28_s19 }
   0x4   :  { %s454_s20 = smov 64   ;;  %s455_s21 = smov 4  }
   0x5   :  { %23 = dma.hbm_to_vmem [thread:$0]  %s16_s14, 512, %s18_s16, [#allocation3], %s454_s20, %s454_s20, %s455_s21  }
   0x6   :  { %s456_s22 = smov [#allocation5]   ;;  %s457_s24 = smov 128  }
   0x7   :  { %s30_s23 = sshll.u32 %s456_s22, 4  ;;  %s458_s25 = smov 8   ;;  %s31_s23 = int_to_ptr.vmem [resolvable:$true] %s30_s23 }
   0x8   :  { %36 = dma.hbm_to_vmem [thread:$0]  %s29_s19, 4096, %s31_s23, [#allocation6], %s457_s24, %s457_s24, %s458_s25  }
   0x9   :  { %447 = dma.done.wait [#allocation3], 512  }
   0xa   :  { %448 = vsyncadd [#allocation3], 4294966784 }
   0xb   :  { %449 = dma.done.wait [#allocation6], 4096  }
   0xc   :  { %450 = vsyncadd [#allocation6], 4294963200  ;;  %v66_v0 = vld [vmem:[#allocation5 + $0x58] sm:$0xff]  ;;  %v65_v2 = vld [vmem:[#allocation5 + $0x50] sm:$0xff]  ;;  %vm91_vm0 = vcmask 261120   ;;  %vm277_vm1 = vcmask 1047556  }
   0xd   :  { %v70_v1 = vld [vmem:[#allocation5 + $0x78] sm:$0xff]  ;;  %153 = vmatpush.msra.mxu2 %v66_v0  ;;  %v69_v3 = vld [vmem:[#allocation5 + $0x70] sm:$0xff]  ;;  %v64_v4 = vld [vmem:[#allocation5 + $0x48] sm:$0xff]  ;;  %v459_v41 = vmov 1983009808   ;;  %s343_s29 = sshll.u32 %s523_s3, 4  ;;  %s344_s29 = int_to_ptr.hbm [resolvable:$true] %s343_s29 }
   0xe   :  { %176 = vmatpush.msra.mxu3 %v70_v1  ;;  %v68_v5 = vld [vmem:[#allocation5 + $0x68] sm:$0xff]  ;;  %v63_v6 = vld [vmem:[#allocation5 + $0x40] sm:$0xff]  ;;  %v58_v8 = vld [vmem:[#allocation5 + $0x18] sm:$0xff]  ;;  %v280_v42 = vunpack.c.l.s4 %v459_v41  ;;  %v460_v58 = vmov 1934713408  }
   0xf   :  { %154 = vmatpush.msra.mxu2 %v65_v2  ;;  %v67_v7 = vld [vmem:[#allocation5 + $0x60] sm:$0xff]  ;;  %v62_v9 = vld [vmem:[#allocation5 + $0x38] sm:$0xff]  ;;  %v49_v10 = vld [vmem:[#allocation2 + $0x8] sm:$0xf]  ;;  %107 = vmatpush.msra.mxu0 %v58_v8  ;;  %v306_v59 = vunpack.c.l.s4 %v460_v58 }
  0x10   :  { %177 = vmatpush.msra.mxu3 %v69_v3  ;;  %v50_v11 = vld [vmem:[#allocation2 + $0xc] sm:$0xf]  ;;  %v82_v12 = vld [vmem:[#allocation5 + $0xd8] sm:$0xff]  ;;  %130 = vmatpush.msra.mxu1 %v62_v9  ;;  %v57_v14 = vld [vmem:[#allocation5 + $0x10] sm:$0xff]  ;;  %v281_v48 = vunpack.c.0.s8 %v280_v42 }
  0x11   :  { %155 = vmatpush.msra.mxu2 %v64_v4  ;;  %v86_v13 = vld [vmem:[#allocation5 + $0xf8] sm:$0xff]  ;;  %v61_v15 = vld [vmem:[#allocation5 + $0x30] sm:$0xff]  ;;  %v56_v18 = vld [vmem:[#allocation5 + $0x8] sm:$0xff]  ;;  %108 = vmatpush.msra.mxu0 %v57_v14 }
  0x12   :  { %178 = vmatpush.msra.mxu3 %v68_v5  ;;  %v81_v16 = vld [vmem:[#allocation5 + $0xd0] sm:$0xff]  ;;  %v60_v19 = vld [vmem:[#allocation5 + $0x28] sm:$0xff]  ;;  %131 = vmatpush.msra.mxu1 %v61_v15  ;;  %v55_v22 = vld [vmem:[#allocation5] sm:$0xff] }
  0x13   :  { %156 = vmatpush.msra.mxu2 %v63_v6  ;;  %v85_v17 = vld [vmem:[#allocation5 + $0xf0] sm:$0xff]  ;;  %v80_v20 = vld [vmem:[#allocation5 + $0xc8] sm:$0xff]  ;;  %v59_v23 = vld [vmem:[#allocation5 + $0x20] sm:$0xff]  ;;  %109 = vmatpush.msra.mxu0 %v56_v18  ;;  %v307_v6 = vunpack.c.0.s8 %v306_v59 }
  0x14   :  { %179 = vmatpush.msra.mxu3 %v67_v7  ;;  %359 = vmatmul.msk.f32.vlgmr.msra.gmra.mxu2 %vm91_vm0, %v49_v10  ;;  %v84_v21 = vld [vmem:[#allocation5 + $0xe8] sm:$0xff]  ;;  %v79_v24 = vld [vmem:[#allocation5 + $0xc0] sm:$0xff]  ;;  %v74_v28 = vld [vmem:[#allocation5 + $0x98] sm:$0xff] }
  0x15   :  { %360 = vmatmul.msk.f32.vlgmr.msra.gmra.mxu3 %vm91_vm0, %v50_v11  ;;  %245 = vmatpush.msrb.mxu2 %v82_v12  ;;  %v83_v25 = vld [vmem:[#allocation5 + $0xe0] sm:$0xff]  ;;  %v78_v29 = vld [vmem:[#allocation5 + $0xb8] sm:$0xff]  ;;  %v73_v32 = vld [vmem:[#allocation5 + $0x90] sm:$0xff] }
  0x16   :  { %268 = vmatpush.msrb.mxu3 %v86_v13  ;;  %132 = vmatpush.msra.mxu1 %v60_v19  ;;  %v47_v26 = vld [vmem:[#allocation2] sm:$0xf]  ;;  %v48_v27 = vld [vmem:[#allocation2 + $0x4] sm:$0xf]  ;;  %v53_v30 = vld [vmem:[#allocation2 + $0x18] sm:$0xf] }
  0x17   :  { %246 = vmatpush.msrb.mxu2 %v81_v16  ;;  %110 = vmatpush.msra.mxu0 %v55_v22  ;;  %v54_v31 = vld [vmem:[#allocation2 + $0x1c] sm:$0xf]  ;;  %v77_v33 = vld [vmem:[#allocation5 + $0xb0] sm:$0xff]  ;;  %v72_v34 = vld [vmem:[#allocation5 + $0x88] sm:$0xff] }
  0x18   :  { %269 = vmatpush.msrb.mxu3 %v85_v17  ;;  %133 = vmatpush.msra.mxu1 %v59_v23  ;;  %v76_v35 = vld [vmem:[#allocation5 + $0xa8] sm:$0xff]  ;;  %v71_v36 = vld [vmem:[#allocation5 + $0x80] sm:$0xff]  ;;  %v51_v38 = vld [vmem:[#allocation2 + $0x10] sm:$0xf] }
  0x19   :  { %247 = vmatpush.msrb.mxu2 %v80_v20  ;;  %357 = vmatmul.msk.f32.vlgmr.msra.gmra.mxu0 %vm91_vm0, %v47_v26  ;;  %v75_v37 = vld [vmem:[#allocation5 + $0xa0] sm:$0xff]  ;;  %v52_v39 = vld [vmem:[#allocation2 + $0x14] sm:$0xf] }
  0x1a   :  { %270 = vmatpush.msrb.mxu3 %v84_v21  ;;  %358 = vmatmul.msk.f32.vlgmr.msra.gmra.mxu1 %vm91_vm0, %v48_v27  ;;  %v374_v40 = vld [vmem:[%s522_s2] ss:$0 sm:$0xff]  ;;  %s461_s2 = smov [#allocation7]  }
  0x1b   :  { %248 = vmatpush.msrb.mxu2 %v79_v24  ;;  %199 = vmatpush.msrb.mxu0 %v74_v28  ;;  %s341_s26 = sshll.u32 %s461_s2, 4  ;;  %s342_s26 = int_to_ptr.vmem [resolvable:$true] %s341_s26 }
  0x1c   :  { %271 = vmatpush.msrb.mxu3 %v83_v25  ;;  %222 = vmatpush.msrb.mxu1 %v78_v29 }
  0x1d   :  { %363 = vmatmul.msk.f32.vlgmr.msrb.gmra.mxu2 %vm91_vm0, %v53_v30  ;;  %364 = vmatmul.msk.f32.vlgmr.msrb.gmra.mxu3 %vm91_vm0, %v54_v31 }
  0x1e   :  { %200 = vmatpush.msrb.mxu0 %v73_v32  ;;  %223 = vmatpush.msrb.mxu1 %v77_v33 }
  0x20   :  { %201 = vmatpush.msrb.mxu0 %v72_v34  ;;  %224 = vmatpush.msrb.mxu1 %v76_v35 }
  0x22   :  { %202 = vmatpush.msrb.mxu0 %v71_v36  ;;  %225 = vmatpush.msrb.mxu1 %v75_v37 }
  0x23   :  { %361 = vmatmul.msk.f32.vlgmr.msrb.gmra.mxu0 %vm91_vm0, %v51_v38  ;;  %362 = vmatmul.msk.f32.vlgmr.msrb.gmra.mxu1 %vm91_vm0, %v52_v39 }
  0x96   :  { %v112_v47 = vpop.f32.mrf.mxu0 }
  0x97   :  { %v158_v43 = vpop.f32.mrf.mxu2  ;;  %v135_v49 = vpop.f32.mrf.mxu1  ;;  %v113_v52 = vadd.f32 %v374_v40, %v112_v47 }
  0x98   :  { %v181_v44 = vpop.f32.mrf.mxu3  ;;  %v159_v45 = vadd.f32 %v374_v40, %v158_v43  ;;  %v136_v53 = vadd.f32 %v374_v40, %v135_v49 }
  0x99   :  { %v182_v46 = vadd.f32 %v374_v40, %v181_v44 }
  0x9a   :  { %v276_v50 = vrot.slane %v159_v45, 4 }
  0x9b   :  { %v283_v51 = vrot.slane %v182_v46, 4 }
  0x9c   :  { %v278_v54 = vsel %vm277_vm1, %v276_v50, %v113_v52 }
  0x9d   :  { %v284_v55 = vsel %vm277_vm1, %v283_v51, %v136_v53  ;;  %v282_v56 = vperm.slane %v278_v54, %v281_v48 }
  0x9e   :  { %v288_v57 = vperm.slane %v284_v55, %v281_v48 }
  0x9f   :  { %v303_v60 = vrot.slane %v282_v56, 4 }
  0xa0   :  { %v301_v61 = vrot.slane %v288_v57, 4  ;;  %v250_v62 = vpop.f32.mrf.mxu2  ;;  %v273_v63 = vpop.f32.mrf.mxu3 }
  0xa1   :  { %v251_v0 = vadd.f32 %v374_v40, %v250_v62  ;;  %v274_v1 = vadd.f32 %v374_v40, %v273_v63  ;;  %v204_v2 = vpop.f32.mrf.mxu0  ;;  %v227_v3 = vpop.f32.mrf.mxu1  ;;  %v304_v10 = vsel %vm277_vm1, %v288_v57, %v303_v60 }
  0xa2   :  { %v205_v4 = vadd.f32 %v374_v40, %v204_v2  ;;  %v228_v5 = vadd.f32 %v374_v40, %v227_v3  ;;  %v302_v9 = vsel %vm277_vm1, %v301_v61, %v282_v56  ;;  %v312_v16 = vperm.slane %v304_v10, %v307_v6 }
  0xa3   :  { %v289_v7 = vrot.slane %v251_v0, 4  ;;  %v295_v8 = vrot.slane %v274_v1, 4  ;;  %v308_v15 = vperm.slane %v302_v9, %v307_v6 }
  0xa4   :  { %v331_v22 = vrot.slane %v312_v16, 4 }
  0xa5   :  { %v290_v11 = vsel %vm277_vm1, %v289_v7, %v205_v4  ;;  %v296_v12 = vsel %vm277_vm1, %v295_v8, %v228_v5  ;;  %v327_v21 = vrot.slane %v308_v15, 4 }
  0xa6   :  { %v294_v13 = vperm.slane %v290_v11, %v281_v48  ;;  %v300_v14 = vperm.slane %v296_v12, %v281_v48 }
  0xa8   :  { %v315_v17 = vrot.slane %v294_v13, 4  ;;  %v313_v18 = vrot.slane %v300_v14, 4 }
  0xaa   :  { %v314_v19 = vsel %vm277_vm1, %v313_v18, %v294_v13  ;;  %v316_v20 = vsel %vm277_vm1, %v300_v14, %v315_v17 }
  0xab   :  { %v320_v23 = vperm.slane %v314_v19, %v307_v6  ;;  %v324_v24 = vperm.slane %v316_v20, %v307_v6 }
  0xad   :  { %v325_v25 = vrot.slane %v320_v23, 4  ;;  %v329_v26 = vrot.slane %v324_v24, 4  ;;  %v328_v27 = vsel %vm277_vm1, %v320_v23, %v327_v21  ;;  %v332_v28 = vsel %vm277_vm1, %v324_v24, %v331_v22 }
  0xae   :  { %334 = vst [vmem:[#allocation7 + $0x8] sm:$0xff] %v328_v27 }
  0xaf   :  { %v326_v29 = vsel %vm277_vm1, %v325_v25, %v308_v15  ;;  %v330_v30 = vsel %vm277_vm1, %v329_v26, %v312_v16  ;;  %336 = vst [vmem:[#allocation7 + $0x18] sm:$0xff] %v332_v28 }
  0xb0   :  { %333 = vst [vmem:[#allocation7] sm:$0xff] %v326_v29 }
  0xb1   :  { %335 = vst [vmem:[#allocation7 + $0x10] sm:$0xff] %v330_v30 }
  0xb2   :  { %349 = dma.vmem_to_hbm [thread:$0]  %s342_s26, 512, %s344_s29, [#allocation4], %s457_s24, %s457_s24, %s458_s25  }
  0xb3   :  { %451 = dma.done.wait [#allocation4], 512  }
  0xb4   :  { %452 = vsyncadd [#allocation4], 4294966784 }
  0xb5   :  { %354 = vsyncpa [#allocation3], 1 }
  0xb6   :  { %355 = vsyncpa [#allocation6], 1 }
  0xb7   :  { %356 = vsyncpa [#allocation4], 1 }

</bundles_post_ra>
